<compile_context>
chip_gen: v7x
topology: tpu7x:2x2x1
jax: 0.10.0
libtpu: 0.0.40
codegen_flags: <defaults>
</compile_context>

<pallas_src>
import jax
import jax.numpy as jnp
from jax.experimental import pallas as pl
from jax.experimental.pallas import tpu as pltpu

IN_F, HID_F, OUT_F = 10, 10, 5


def toy_model_kernel(x_ref, w1_ref, b1_ref, w2_ref, b2_ref, o_ref):
    # Transposed ("features x batch") layout: batch rides the lane axis, so all
    # vreg loads and the output store are full-width / unmasked.
    #   x_ref : (10, TB)   w1_ref: (10, 10)  b1_ref: (10, 1)
    #   w2_ref: (5, 10)    b2_ref: (5, 1)    o_ref : (5, TB)
    x = x_ref[...]
    # jnp.dot promotes bf16 x to f32 here (cheap VPU cast); MXU accumulates f32.
    h = jnp.dot(w1_ref[...], x, preferred_element_type=jnp.float32)
    h = jnp.maximum(h + b1_ref[...], 0.0)            # bias bcast over lanes; ReLU on VPU
    y = jnp.dot(w2_ref[...], h, preferred_element_type=jnp.float32)
    o_ref[...] = (y + b2_ref[...]).astype(o_ref.dtype)


def toy_model_forward_t(x_t, w1, b1, w2, b2, *, block_b=65536, out_dtype=None):
    """Performance path. x_t: (10, B) with batch on lanes. Returns y_t: (5, B).

    w1: (10, 10), w2: (5, 10) in torch (out, in) layout; b1: (10, 1), b2: (5, 1).
    x_t may be f32 or bf16; output dtype defaults to x_t.dtype. Accumulation is
    always f32. block_b must be a multiple of 128; prefer a tb that divides B
    (or pad B at the caller) so the last grid step isn't a mostly-masked tile.
    """
    assert x_t.shape[0] == IN_F
    assert block_b % 128 == 0
    B = x_t.shape[1]
    out_dtype = x_t.dtype if out_dtype is None else out_dtype

    # tb is either a multiple of 128 or the full batch dim (both legal blocks).
    tb = min(block_b, B)
    grid = (pl.cdiv(B, tb),)

    x_bytes = jnp.dtype(x_t.dtype).itemsize
    o_bytes = jnp.dtype(out_dtype).itemsize
    flops = 2 * B * (IN_F * HID_F + HID_F * OUT_F)
    bytes_accessed = B * (IN_F * x_bytes + OUT_F * o_bytes) + 4 * (
        IN_F * HID_F + HID_F + HID_F * OUT_F + OUT_F)

    return pl.pallas_call(
        toy_model_kernel,
        out_shape=jax.ShapeDtypeStruct((OUT_F, B), out_dtype),
        grid=grid,
        in_specs=[
            pl.BlockSpec((IN_F, tb), lambda i: (0, i)),     # x^T tile (streamed)
            pl.BlockSpec((HID_F, IN_F), lambda i: (0, 0)),  # W1 (resident)
            pl.BlockSpec((HID_F, 1), lambda i: (0, 0)),     # b1 (resident)
            pl.BlockSpec((OUT_F, HID_F), lambda i: (0, 0)), # W2 (resident)
            pl.BlockSpec((OUT_F, 1), lambda i: (0, 0)),     # b2 (resident)
        ],
        out_specs=pl.BlockSpec((OUT_F, tb), lambda i: (0, i)),
        compiler_params=pltpu.CompilerParams(
            dimension_semantics=("parallel",)),             # batch tiles across TCs
        cost_estimate=pl.CostEstimate(
            flops=flops, transcendentals=0, bytes_accessed=bytes_accessed),
    )(x_t, w1, b1, w2, b2)


def toy_model_forward(x, w1, b1, w2, b2, *, block_b=65536):
    """Convenience wrapper (torch-compatible API). x: (B, 10) -> (B, 5).

    The two XLA transposes here are extra HBM passes; they exist only for API
    parity with the torch module. Performance-sensitive callers should keep the
    (features, batch) layout end-to-end and call toy_model_forward_t directly.
    """
    y_t = toy_model_forward_t(x.T, w1, b1, w2, b2, block_b=block_b)
    return y_t.T


def init_params(key, in_f=IN_F, hid_f=HID_F, out_f=OUT_F):
    # nn.Linear default init: U(-1/sqrt(fan_in), 1/sqrt(fan_in)), torch layout.
    k1, k2, k3, k4 = jax.random.split(key, 4)
    bound1 = 1.0 / jnp.sqrt(in_f)
    bound2 = 1.0 / jnp.sqrt(hid_f)
    w1 = jax.random.uniform(k1, (hid_f, in_f), jnp.float32, -bound1, bound1)
    b1 = jax.random.uniform(k2, (hid_f, 1), jnp.float32, -bound1, bound1)
    w2 = jax.random.uniform(k3, (out_f, hid_f), jnp.float32, -bound2, bound2)
    b2 = jax.random.uniform(k4, (out_f, 1), jnp.float32, -bound2, bound2)
    return w1, b1, w2, b2


if __name__ == "__main__":
    key = jax.random.PRNGKey(0)
    k_x, k_x2, k_x3, k_p = jax.random.split(key, 4)
    w1, b1, w2, b2 = init_params(k_p)

    def ref_forward(x):
        h = jnp.maximum(x @ w1.T + b1[:, 0], 0.0)
        return h @ w2.T + b2[:, 0]

    # 1) Tiny demo batch through the row-major convenience wrapper.
    B = 8
    x = jax.random.normal(k_x, (B, IN_F), jnp.float32)
    out = jax.block_until_ready(toy_model_forward(x, w1, b1, w2, b2))
    assert out.shape == (B, OUT_F)
    assert jnp.allclose(out, ref_forward(x), atol=1e-5, rtol=1e-5)

    # 2) Batch-on-lanes perf path with grid > 1 (small block_b for the demo)
    #    and a ragged last tile (300 % 128 != 0) to exercise masking.
    B2 = 300
    x2 = jax.random.normal(k_x2, (B2, IN_F), jnp.float32)
    y2_t = jax.block_until_ready(
        toy_model_forward_t(x2.T, w1, b1, w2, b2, block_b=128))
    assert y2_t.shape == (OUT_F, B2)
    assert jnp.allclose(y2_t.T, ref_forward(x2), atol=1e-5, rtol=1e-5)

    # 3) bf16 I/O path (halves HBM traffic once bandwidth-bound); f32 accum.
    B3 = 256
    x3 = jax.random.normal(k_x3, (B3, IN_F), jnp.float32)
    y3_t = jax.block_until_ready(
        toy_model_forward_t(x3.T.astype(jnp.bfloat16), w1, b1, w2, b2,
                            block_b=128))
    assert y3_t.shape == (OUT_F, B3) and y3_t.dtype == jnp.bfloat16
    assert jnp.allclose(y3_t.T.astype(jnp.float32), ref_forward(x3),
                        atol=5e-2, rtol=5e-2)

    print("KERNEL_OK")
</pallas_src>

<mosaic_0001>
module attributes {stable_mosaic.version = 11 : i64} {
  func.func @toy_model_kernel(%arg0: i32, %arg1: memref<10x8xf32, #tpu.memory_space<vmem>>, %arg2: memref<10x10xf32, #tpu.memory_space<vmem>>, %arg3: memref<10x1xf32, #tpu.memory_space<vmem>>, %arg4: memref<5x10xf32, #tpu.memory_space<vmem>>, %arg5: memref<5x1xf32, #tpu.memory_space<vmem>>, %arg6: memref<5x8xf32, #tpu.memory_space<vmem>>) attributes {dimension_semantics = [#tpu.dimension_semantics<parallel>], iteration_bounds = array<i64: 1>, scalar_prefetch = 0 : i64, scratch_operands = 0 : i64, tpu.core_type = #tpu.core_type<tc>, window_params = [{transform_indices = @transform_0, window_bounds = array<i64: 10, 8>}, {pipeline_mode = #tpu.pipeline_mode<synchronous>, transform_indices = @transform_1, window_bounds = array<i64: 10, 10>}, {pipeline_mode = #tpu.pipeline_mode<synchronous>, transform_indices = @transform_2, window_bounds = array<i64: 10, 1>}, {pipeline_mode = #tpu.pipeline_mode<synchronous>, transform_indices = @transform_3, window_bounds = array<i64: 5, 10>}, {pipeline_mode = #tpu.pipeline_mode<synchronous>, transform_indices = @transform_4, window_bounds = array<i64: 5, 1>}, {transform_indices = @transform_5, window_bounds = array<i64: 5, 8>}]} {
    %c0 = arith.constant 0 : index
    %c0_0 = arith.constant 0 : index
    %0 = vector.load %arg1[%c0, %c0_0] : memref<10x8xf32, #tpu.memory_space<vmem>>, vector<10x8xf32>
    %c0_1 = arith.constant 0 : index
    %c0_2 = arith.constant 0 : index
    %1 = vector.load %arg2[%c0_1, %c0_2] : memref<10x10xf32, #tpu.memory_space<vmem>>, vector<10x10xf32>
    %cst = arith.constant dense<0.000000e+00> : vector<10x8xf32>
    %2 = tpu.matmul %1, %0, %cst {dimension_numbers = #tpu.dot_dimension_numbers<[1], [0], [0], [1], [0, 0, 1, 1], [], []>} : vector<10x10xf32>, vector<10x8xf32>, vector<10x8xf32> -> vector<10x8xf32>
    %c0_3 = arith.constant 0 : index
    %c0_4 = arith.constant 0 : index
    %3 = vector.load %arg3[%c0_3, %c0_4] : memref<10x1xf32, #tpu.memory_space<vmem>>, vector<10x1xf32>
    %4 = vector.broadcast %3 : vector<10x1xf32> to vector<10x8xf32>
    %5 = arith.addf %2, %4 : vector<10x8xf32>
    %cst_5 = arith.constant 0.000000e+00 : f32
    %6 = vector.broadcast %cst_5 : f32 to vector<10x8xf32>
    %7 = arith.maximumf %5, %6 : vector<10x8xf32>
    %c0_6 = arith.constant 0 : index
    %c0_7 = arith.constant 0 : index
    %8 = vector.load %arg4[%c0_6, %c0_7] : memref<5x10xf32, #tpu.memory_space<vmem>>, vector<5x10xf32>
    %cst_8 = arith.constant dense<0.000000e+00> : vector<5x8xf32>
    %9 = tpu.matmul %8, %7, %cst_8 {dimension_numbers = #tpu.dot_dimension_numbers<[1], [0], [0], [1], [0, 0, 1, 1], [], []>} : vector<5x10xf32>, vector<10x8xf32>, vector<5x8xf32> -> vector<5x8xf32>
    %c0_9 = arith.constant 0 : index
    %c0_10 = arith.constant 0 : index
    %10 = vector.load %arg5[%c0_9, %c0_10] : memref<5x1xf32, #tpu.memory_space<vmem>>, vector<5x1xf32>
    %11 = vector.broadcast %10 : vector<5x1xf32> to vector<5x8xf32>
    %12 = arith.addf %9, %11 : vector<5x8xf32>
    %c0_11 = arith.constant 0 : index
    %c0_12 = arith.constant 0 : index
    %13 = vector.load %arg6[%c0_11, %c0_12] : memref<5x8xf32, #tpu.memory_space<vmem>>, vector<5x8xf32>
    tpu.vector_store %arg6[%c0_11, %c0_12], %12 {strides = array<i32>} : memref<5x8xf32, #tpu.memory_space<vmem>>, vector<5x8xf32>,
    return
  }
  func.func @transform_0(%arg0: i32) -> (i32, i32) {
    %c0_i32 = arith.constant 0 : i32
    %c0_i32_0 = arith.constant 0 : i32
    return %c0_i32, %arg0 : i32, i32
  }
  func.func @transform_1(%arg0: i32) -> (i32, i32) {
    %c0_i32 = arith.constant 0 : i32
    %c0_i32_0 = arith.constant 0 : i32
    %c0_i32_1 = arith.constant 0 : i32
    return %c0_i32, %c0_i32_0 : i32, i32
  }
  func.func @transform_2(%arg0: i32) -> (i32, i32) {
    %c0_i32 = arith.constant 0 : i32
    %c0_i32_0 = arith.constant 0 : i32
    %c0_i32_1 = arith.constant 0 : i32
    return %c0_i32, %c0_i32_0 : i32, i32
  }
  func.func @transform_3(%arg0: i32) -> (i32, i32) {
    %c0_i32 = arith.constant 0 : i32
    %c0_i32_0 = arith.constant 0 : i32
    %c0_i32_1 = arith.constant 0 : i32
    return %c0_i32, %c0_i32_0 : i32, i32
  }
  func.func @transform_4(%arg0: i32) -> (i32, i32) {
    %c0_i32 = arith.constant 0 : i32
    %c0_i32_0 = arith.constant 0 : i32
    %c0_i32_1 = arith.constant 0 : i32
    return %c0_i32, %c0_i32_0 : i32, i32
  }
  func.func @transform_5(%arg0: i32) -> (i32, i32) {
    %c0_i32 = arith.constant 0 : i32
    %c0_i32_0 = arith.constant 0 : i32
    return %c0_i32, %arg0 : i32, i32
  }
}

</mosaic_0001>

<bundles_post_ra>
// kernel: tpu_custom_call.1
= control target key start
LH: loop header
LB: loop body
LE: loop exit
PB: predicated region body
PF: predicated region fallthrough
CT: control target
= control target key end

     0   :  { %vm44_vm0 = vcmask 1041408   ;;  %vm292_vm1 = vmmov 1   ;;  %vm37_vm3 = vcmask 80896   ;;  %v293_v6 = vmov 0   ;;  %s377_s0 = inlined_call_operand.vmem [shape: f32[10,8], index: 0, kind: input, shape index: {}]   ;;  %s378_s1 = inlined_call_operand.vmem [shape: f32[10,10], index: 1, kind: input, shape index: {}]   ;;  %s379_s2 = inlined_call_operand.vmem [shape: f32[10,1], index: 2, kind: input, shape index: {}]   ;;  %s380_s3 = inlined_call_operand.vmem [shape: f32[5,10], index: 3, kind: input, shape index: {}]   ;;  %s381_s4 = inlined_call_operand.vmem [shape: f32[5,1], index: 4, kind: input, shape index: {}]   ;;  %s382_s5 = inlined_call_operand.hbm [shape: f32[5,8], index: 5, kind: output, shape index: {}]  }
   0x1   :  { %v21_v0 = vld [vmem:[%s377_s0] sm:$0xff]  ;;  %v22_v1 = vld [vmem:[%s377_s0 + $0x8] sm:$0x3]  ;;  %vm337_vm2 = vmpackc.low %vm44_vm0, %vm292_vm1  ;;  %266 = vset.pattern.permute.xlu0 %v293_v6 }
   0x2   :  { %v23_v2 = vld [vmem:[%s378_s1] sm:$0xff]  ;;  %v250_v3 = vpack.c.bf16 %v22_v1, %v21_v0 }
   0x3   :  { %v25_v5 = vld [vmem:[%s379_s2] sm:$0xff]  ;;  %240 = vmatprep.mubr.msk.f32.mxu0 %vm37_vm3, %v23_v2 }
   0x4   :  { %10 = vsyncpa [#allocation3], 0  ;;  %252 = vmatprep.subr.msk.bf16.mxu0 %vm337_vm2, %v250_v3  ;;  %29 = vperm.xlu0 %266, %v25_v5   ;;  %v24_v7 = vld [vmem:[%s378_s1 + $0x8] sm:$0x3]  ;;  %v294_v9 = vmov 0.0|0.0   ;;  %vm295_vm4 = vmmov 0  }
   0x5   :  { %255 = vmatpush3.bf16.msk.msra.mxu0 %vm337_vm2, %v250_v3  ;;  %v26_v8 = vld [vmem:[%s379_s2 + $0x8] sm:$0x3]  ;;  %267 = vset.pattern.permute.xlu1 %v293_v6  ;;  %v296_v10 = vmov 0.0   ;;  %v126_v11 = vld [vmem:[%s381_s4] sm:$0x1f]  ;;  %s297_s4 = smov [#allocation2]  }
   0x6   :  { %256 = vmatprep.subr.bf16.mxu1 %v294_v9  ;;  %247 = vmatprep.mubr.msk.f32.mxu1 %vm295_vm4, %v296_v10  ;;  %v125_v21 = vld [vmem:[%s380_s3] sm:$0x1f]  ;;  %s216_s6 = sshll.u32 %s297_s4, 4  ;;  %vm208_vm5 = vcmask 61440   ;;  %s217_s6 = int_to_ptr.vmem [resolvable:$true] %s216_s6 }
   0x7   :  { %129 = vperm.xlu1 %267, %v126_v11   ;;  %s268_s7 = scalar_lea.vmem %s217_s6, 128  ;;  %p273_p1 = scmp.lt.s32.totalorder %s217_s6, %s217_s6 }
   0x8   :  { %241 = vmatmul.mubr.msk.f32.vlgmr.msra.gmra.mrb[0].mxu0 %vm37_vm3, %v24_v7  ;;  %34 = vperm.xlu0 %266, %v26_v8   ;;  %p269_p0 = scmp.ne.s32.totalorder %s217_s6, %s268_s7  ;;  %p274_p2 = scmp.lt.s32.totalorder %s268_s7, %s268_s7 }
   0xa   :  { %p275_p3 = por %p274_p2, %p273_p1 }
   0xc   :  { %p276_p4 = pnand %p275_p3, %p269_p0 }
  0x83   :  { %v30_v12 = vpop.permute.xlu0 %29 }
  0x86   :  { %v130_v22 = vpop.permute.xlu1 %129 }
  0x87   :  { %v35_v13 = vpop.permute.xlu0 %34 }
  0xdb   :  { %v242_v14 = vpop.f32.mrb[0].mxu0 }
  0xdc   :  { %v120_v15 = vadd.f32 %v242_v14, %v35_v13  ;;  %v114_v16 = vpop.f32.mrb[1].mxu0 }
  0xdd   :  { %v115_v17 = vadd.f32 %v114_v16, %v30_v12 }
  0xde   :  { %v124_v18 = vmax.f32 %v120_v15, 0.0 }
  0xdf   :  { %v123_v19 = vmax.f32 %v115_v17, 0.0 }
  0xe1   :  { %v257_v20 = vpack.c.bf16 %v124_v18, %v123_v19 }
  0xe3   :  { %259 = vmatpush3.bf16.msk.msra.mxu1 %vm337_vm2, %v257_v20 }
  0xe6   :  { %248 = vmatmul.mubr.msk.f32.vlgmr.msra.gmra.mrb[0].mxu1 %vm37_vm3, %v125_v21 }
 0x1b9   :  { %v204_v23 = vpop.f32.mrb[0].mxu1 }
 0x1ba   :  { %v205_v24 = vadd.f32 %v204_v23, %v130_v22  ;;  %v249_v25 = vpop.f32.mrb[1].mxu1 }
 0x1bc   :  { %209 = vst.msk [vmem:[#allocation2] sm:$0x1f] %vm208_vm5, %v205_v24 }
 0x1bd   :  { %279 = shalt.err (!%p276_p4)
}
 0x1be   :  { %s280_s9 = scalar_lea.hbm %s382_s5, 128 }
 0x1bf   :  { %p281_p5 = scmp.ne.s32.totalorder %s382_s5, %s280_s9  ;;  %p284_p6 = scmp.lt.u32.totalorder %s280_s9, %s382_s5 }
 0x1c1   :  { %p286_p7 = pnand %p284_p6, %p281_p5 }
 0x1c3   :  { %289 = shalt.err (!%p286_p7)
}
 0x1c4   :  { %219 = dma.vmem_to_hbm [thread:$0]  %s217_s6, 128, %s382_s5, [#allocation3]  }
 0x1c5   :  { %290 = dma.done.wait [#allocation3], 128  }
 0x1c6   :  { %291 = vsyncadd [#allocation3], 4294967168 }
 0x1c7   :  { %223 = vsyncpa [#allocation3], 1 }

</bundles_post_ra>
